<compile_context>
chip_gen: v7x
topology: tpu7x:2x2x1
jax: 0.10.0
libtpu: 0.0.40
codegen_flags: <defaults>
</compile_context>

<pallas_src>
import jax
import jax.numpy as jnp
from jax.experimental import pallas as pl
from jax.experimental.pallas import tpu as pltpu


def _cdiv(a, b):
    return (a + b - 1) // b


def _round_up(x, m):
    return ((x + m - 1) // m) * m


def _critic_kernel(x_ref, w1_ref, b1_ref, w2_ref, b2_ref, w3_ref, b3_ref, o_ref):
    # ---- Layer 1: single [tb, sd+ad] @ [sd+ad, 400] matmul (concat fused) ----
    h1 = jnp.dot(x_ref[...], w1_ref[...],
                 preferred_element_type=jnp.float32) + b1_ref[...]
    h1 = jnp.maximum(h1, 0.0)                                   # [tb, 400] f32

    # ---- Layer 2: bf16 MXU operands, f32 accumulation, f32 bias/ReLU --------
    h2 = jnp.dot(h1.astype(jnp.bfloat16), w2_ref[...],
                 preferred_element_type=jnp.float32) + b2_ref[...]
    h2 = jnp.maximum(h2, 0.0)                                   # [tb, 300] f32

    # ---- Layer 3 (300 -> 1): VPU multiply + lane reduction -------------------
    q = jnp.sum(h2 * w3_ref[...], axis=-1) + b3_ref[0]          # [tb] f32
    # Lane-dense store: relayout [tb] -> [1, tb] (XLU slot has slack) so the
    # HBM writeback is one dense row instead of tb masked single-lane stores.
    o_ref[...] = q.reshape(1, q.shape[0]).astype(o_ref.dtype)   # [1, tb]


def critic_forward(state, action, params, *, batch_tile=1024):
    """state: [B, state_dim], action: [B, action_dim] -> q: [B, 1] (f32)."""
    w1, b1, w2, b2, w3, b3 = params
    B, sd = state.shape
    ad = action.shape[1]
    K = sd + ad
    H1 = w1.shape[1]
    H2 = w2.shape[1]

    # Fuse torch.cat once in the wrapper (single input BlockSpec, one full-K
    # layer-1 matmul in the kernel).  48 B/row copy -> negligible HBM traffic.
    x = jnp.concatenate([state, action], axis=1)         # [B, sd+ad] f32

    # One-time (per call; folded under jit) parameter prep.
    w2b = w2.astype(jnp.bfloat16)                         # [400, 300] bf16
    w3row = w3.reshape(1, H2).astype(jnp.float32)         # [1, 300]  f32 (VPU)
    b3s = b3.reshape(-1).astype(jnp.float32)              # [1]       f32 (SMEM)

    # Batch tiling: pick tile count first, then the smallest 8-aligned tile
    # that covers B -> padding is < 8 rows per tile instead of up to a full
    # tile.  Force >= 2 tiles when possible so both v7x TensorCores get work.
    num_tiles = max(_cdiv(B, batch_tile), 1)
    if num_tiles == 1 and B > 8:
        num_tiles = 2
    tb = _round_up(_cdiv(B, num_tiles), 8)
    Bp = tb * num_tiles
    if Bp != B:
        x = jnp.pad(x, ((0, Bp - B), (0, 0)))
    grid = (num_tiles,)

    # Weights/biases: full-array blocks with constant index_maps -> fetched
    # once, resident in VMEM across all batch tiles.
    def const(shape):
        return pl.BlockSpec(shape, lambda i: (0,) * len(shape))

    out = pl.pallas_call(
        _critic_kernel,
        out_shape=jax.ShapeDtypeStruct((num_tiles, tb), jnp.float32),
        grid=grid,
        in_specs=[
            pl.BlockSpec((tb, K), lambda i: (i, 0)),    # fused [state|action] tile
            const((K, H1)),                             # W1
            const((1, H1)),                             # b1
            const((H1, H2)),                            # W2 (bf16)
            const((1, H2)),                             # b2
            const((1, H2)),                             # W3 as a row (VPU path)
            pl.BlockSpec(memory_space=pltpu.MemorySpace.SMEM),  # b3 scalar
        ],
        out_specs=pl.BlockSpec((1, tb), lambda i: (i, 0)),      # lane-dense row
        compiler_params=pltpu.CompilerParams(
            dimension_semantics=("parallel",),          # megacore-shard batch
            vmem_limit_bytes=32 * 1024 * 1024,          # <= v7x 48 MiB ceiling
        ),
    )(x, w1, b1, w2b, b2, w3row, b3s)

    # Undo the lane-dense layout: (num_tiles, tb) -> (B, 1).
    return out.reshape(-1)[:B].reshape(B, 1)


def init_critic_params(key, state_dim, action_dim):
    """Deterministic PyTorch-style U(-1/sqrt(fan_in), 1/sqrt(fan_in)) init."""
    dims = [(state_dim + action_dim, 400), (400, 300), (300, 1)]
    params = []
    for (fan_in, fan_out) in dims:
        key, kw, kb = jax.random.split(key, 3)
        bound = 1.0 / jnp.sqrt(jnp.float32(fan_in))
        w = jax.random.uniform(kw, (fan_in, fan_out), jnp.float32, -bound, bound)
        b = jax.random.uniform(kb, (1, fan_out), jnp.float32, -bound, bound)
        params += [w, b]
    return tuple(params)


def critic_reference(state, action, params):
    w1, b1, w2, b2, w3, b3 = params
    x = jnp.concatenate([state, action], axis=1)
    x = jnp.maximum(x @ w1 + b1, 0.0)
    x = jnp.maximum(x @ w2 + b2, 0.0)
    return x @ w3 + b3


if __name__ == "__main__":
    B, state_dim, action_dim = 2, 8, 4

    key = jax.random.PRNGKey(0)
    k_params, k_state, k_action = jax.random.split(key, 3)
    params = init_critic_params(k_params, state_dim, action_dim)

    state = jax.random.normal(k_state, (B, state_dim), jnp.float32)
    action = jax.random.normal(k_action, (B, action_dim), jnp.float32)

    critic_forward_jit = jax.jit(critic_forward)
    q = critic_forward_jit(state, action, params)
    q = jax.block_until_ready(q)

    q_ref = critic_reference(state, action, params)
    assert q.shape == (B, 1), q.shape
    # Layer 2 runs with bf16 MXU operands -> loosened tolerance vs f32 reference.
    assert jnp.allclose(q, q_ref, atol=2e-2, rtol=2e-2), (q, q_ref)

    print("KERNEL_OK")
</pallas_src>

<mosaic_0001>
module attributes {stable_mosaic.version = 11 : i64} {
  func.func @_critic_kernel(%arg0: i32, %arg1: memref<8x12xf32, #tpu.memory_space<vmem>>, %arg2: memref<12x400xf32, #tpu.memory_space<vmem>>, %arg3: memref<1x400xf32, #tpu.memory_space<vmem>>, %arg4: memref<400x300xbf16, #tpu.memory_space<vmem>>, %arg5: memref<1x300xf32, #tpu.memory_space<vmem>>, %arg6: memref<1x300xf32, #tpu.memory_space<vmem>>, %arg7: memref<1xf32, #tpu.memory_space<smem>>, %arg8: memref<1x8xf32, #tpu.memory_space<vmem>>) attributes {dimension_semantics = [#tpu.dimension_semantics<parallel>], iteration_bounds = array<i64: 1>, scalar_prefetch = 0 : i64, scratch_operands = 0 : i64, tpu.core_type = #tpu.core_type<tc>, window_params = [{transform_indices = @transform_0, window_bounds = array<i64: 8, 12>}, {pipeline_mode = #tpu.pipeline_mode<synchronous>, transform_indices = @transform_1, window_bounds = array<i64: 12, 400>}, {pipeline_mode = #tpu.pipeline_mode<synchronous>, transform_indices = @transform_2, window_bounds = array<i64: 1, 400>}, {pipeline_mode = #tpu.pipeline_mode<synchronous>, transform_indices = @transform_3, window_bounds = array<i64: 400, 300>}, {pipeline_mode = #tpu.pipeline_mode<synchronous>, transform_indices = @transform_4, window_bounds = array<i64: 1, 300>}, {pipeline_mode = #tpu.pipeline_mode<synchronous>, transform_indices = @transform_5, window_bounds = array<i64: 1, 300>}, {transform_indices = @transform_6, window_bounds = array<i64: 1>}, {transform_indices = @transform_7, window_bounds = array<i64: 1, 8>}]} {
    %c0 = arith.constant 0 : index
    %c0_0 = arith.constant 0 : index
    %0 = vector.load %arg1[%c0, %c0_0] : memref<8x12xf32, #tpu.memory_space<vmem>>, vector<8x12xf32>
    %c0_1 = arith.constant 0 : index
    %c0_2 = arith.constant 0 : index
    %1 = vector.load %arg2[%c0_1, %c0_2] : memref<12x400xf32, #tpu.memory_space<vmem>>, vector<12x400xf32>
    %cst = arith.constant dense<0.000000e+00> : vector<8x400xf32>
    %2 = tpu.matmul %0, %1, %cst {dimension_numbers = #tpu.dot_dimension_numbers<[1], [0], [0], [1], [0, 0, 1, 1], [], []>} : vector<8x12xf32>, vector<12x400xf32>, vector<8x400xf32> -> vector<8x400xf32>
    %c0_3 = arith.constant 0 : index
    %c0_4 = arith.constant 0 : index
    %3 = vector.load %arg3[%c0_3, %c0_4] : memref<1x400xf32, #tpu.memory_space<vmem>>, vector<1x400xf32>
    %4 = vector.broadcast %3 : vector<1x400xf32> to vector<8x400xf32>
    %5 = arith.addf %2, %4 : vector<8x400xf32>
    %cst_5 = arith.constant 0.000000e+00 : f32
    %6 = vector.broadcast %cst_5 : f32 to vector<8x400xf32>
    %7 = arith.maximumf %5, %6 : vector<8x400xf32>
    %8 = arith.truncf %7 : vector<8x400xf32> to vector<8x400xbf16>
    %c0_6 = arith.constant 0 : index
    %c0_7 = arith.constant 0 : index
    %9 = vector.load %arg4[%c0_6, %c0_7] : memref<400x300xbf16, #tpu.memory_space<vmem>>, vector<400x300xbf16>
    %cst_8 = arith.constant dense<0.000000e+00> : vector<8x300xf32>
    %10 = tpu.matmul %8, %9, %cst_8 {dimension_numbers = #tpu.dot_dimension_numbers<[1], [0], [0], [1], [0, 0, 1, 1], [], []>} : vector<8x400xbf16>, vector<400x300xbf16>, vector<8x300xf32> -> vector<8x300xf32>
    %c0_9 = arith.constant 0 : index
    %c0_10 = arith.constant 0 : index
    %11 = vector.load %arg5[%c0_9, %c0_10] : memref<1x300xf32, #tpu.memory_space<vmem>>, vector<1x300xf32>
    %12 = vector.broadcast %11 : vector<1x300xf32> to vector<8x300xf32>
    %13 = arith.addf %10, %12 : vector<8x300xf32>
    %cst_11 = arith.constant 0.000000e+00 : f32
    %14 = vector.broadcast %cst_11 : f32 to vector<8x300xf32>
    %15 = arith.maximumf %13, %14 : vector<8x300xf32>
    %c0_12 = arith.constant 0 : index
    %c0_13 = arith.constant 0 : index
    %16 = vector.load %arg6[%c0_12, %c0_13] : memref<1x300xf32, #tpu.memory_space<vmem>>, vector<1x300xf32>
    %17 = vector.broadcast %16 : vector<1x300xf32> to vector<8x300xf32>
    %18 = arith.mulf %15, %17 : vector<8x300xf32>
    %cst_14 = arith.constant dense<0.000000e+00> : vector<8xf32>
    %19 = vector.multi_reduction <add>, %18, %cst_14 [1] : vector<8x300xf32> to vector<8xf32>
    %c0_15 = arith.constant 0 : index
    %20 = memref.load %arg7[%c0_15] : memref<1xf32, #tpu.memory_space<smem>>
    %21 = vector.broadcast %20 : f32 to vector<8xf32>
    %22 = arith.addf %19, %21 : vector<8xf32>
    %23 = vector.shape_cast %22 : vector<8xf32> to vector<1x8xf32>
    %c0_16 = arith.constant 0 : index
    %c0_17 = arith.constant 0 : index
    %24 = vector.load %arg8[%c0_16, %c0_17] : memref<1x8xf32, #tpu.memory_space<vmem>>, vector<1x8xf32>
    tpu.vector_store %arg8[%c0_16, %c0_17], %23 {strides = array<i32>} : memref<1x8xf32, #tpu.memory_space<vmem>>, vector<1x8xf32>,
    return
  }
  func.func @transform_0(%arg0: i32) -> (i32, i32) {
    %c0_i32 = arith.constant 0 : i32
    %c0_i32_0 = arith.constant 0 : i32
    return %arg0, %c0_i32 : i32, i32
  }
  func.func @transform_1(%arg0: i32) -> (i32, i32) {
    %c0_i32 = arith.constant 0 : i32
    %c0_i32_0 = arith.constant 0 : i32
    %c0_i32_1 = arith.constant 0 : i32
    return %c0_i32, %c0_i32_0 : i32, i32
  }
  func.func @transform_2(%arg0: i32) -> (i32, i32) {
    %c0_i32 = arith.constant 0 : i32
    %c0_i32_0 = arith.constant 0 : i32
    %c0_i32_1 = arith.constant 0 : i32
    return %c0_i32, %c0_i32_0 : i32, i32
  }
  func.func @transform_3(%arg0: i32) -> (i32, i32) {
    %c0_i32 = arith.constant 0 : i32
    %c0_i32_0 = arith.constant 0 : i32
    %c0_i32_1 = arith.constant 0 : i32
    return %c0_i32, %c0_i32_0 : i32, i32
  }
  func.func @transform_4(%arg0: i32) -> (i32, i32) {
    %c0_i32 = arith.constant 0 : i32
    %c0_i32_0 = arith.constant 0 : i32
    %c0_i32_1 = arith.constant 0 : i32
    return %c0_i32, %c0_i32_0 : i32, i32
  }
  func.func @transform_5(%arg0: i32) -> (i32, i32) {
    %c0_i32 = arith.constant 0 : i32
    %c0_i32_0 = arith.constant 0 : i32
    %c0_i32_1 = arith.constant 0 : i32
    return %c0_i32, %c0_i32_0 : i32, i32
  }
  func.func @transform_6(%arg0: i32) -> i32 {
    %c0_i32 = arith.constant 0 : i32
    %c0_i32_0 = arith.constant 0 : i32
    return %c0_i32 : i32
  }
  func.func @transform_7(%arg0: i32) -> (i32, i32) {
    %c0_i32 = arith.constant 0 : i32
    %c0_i32_0 = arith.constant 0 : i32
    return %arg0, %c0_i32 : i32, i32
  }
}

</mosaic_0001>

<bundles_post_ra>
// kernel: critic_forward.1
= control target key start
LH: loop header
LB: loop body
LE: loop exit
PB: predicated region body
PF: predicated region fallthrough
CT: control target
= control target key end

     0   :  { %vm63_vm0 = vcmask 1043456   ;;  %vm1181_vm1 = vmmov 1   ;;  %v1182_v3 = vmov 0.0   ;;  %vm59_vm3 = vcmask 97280   ;;  %s1540_s1 = inlined_call_operand.vmem [shape: f32[12,400], index: 1, kind: input, shape index: {}]   ;;  %s1541_s0 = inlined_call_operand.vmem [shape: f32[8,12], index: 0, kind: input, shape index: {}]   ;;  %s1542_s3 = inlined_call_operand.vmem [shape: bf16[400,300], index: 3, kind: input, shape index: {}]   ;;  %s1543_s2 = inlined_call_operand.vmem [shape: f32[1,400], index: 2, kind: input, shape index: {}]   ;;  %s1544_s4 = inlined_call_operand.vmem [shape: f32[1,300], index: 4, kind: input, shape index: {}]   ;;  %s1545_s5 = inlined_call_operand.vmem [shape: f32[1,300], index: 5, kind: input, shape index: {}]   ;;  %s1546_s6 = inlined_call_operand.<no memory space> [shape: f32[1], index: 6, kind: input, shape index: {}]   ;;  %s1547_s7 = inlined_call_operand.vmem [shape: f32[1,8], index: 7, kind: output, shape index: {}]  }
   0x1   :  { %v30_v0 = vld [vmem:[%s1540_s1 + $0x8] sm:$0xff]  ;;  %vm1230_vm2 = vmpackc.low %vm63_vm0, %vm1181_vm1  ;;  %140 = vmatprep.mubr.f32.mxu1 %v1182_v3  ;;  %v29_v5 = vld [vmem:[%s1540_s1] sm:$0xff]  ;;  %vm743_vm4 = vcmask 130048   ;;  %vm933_vm5 = vcmask 359424   ;;  %vm949_vm6 = vcmask 57344  }
   0x2   :  { %v34_v1 = vld [vmem:[%s1540_s1 + $0x28] sm:$0xf]  ;;  %v33_v6 = vld [vmem:[%s1540_s1 + $0x20] sm:$0xf]  ;;  %v32_v9 = vld [vmem:[%s1540_s1 + $0x18] sm:$0xff] }
   0x3   :  { %v1060_v4 = vpack.c.bf16 %v34_v1, %v30_v0  ;;  %v1063_v7 = vpack.c.bf16 %v33_v6, %v29_v5  ;;  %v28_v8 = vld [vmem:[%s1541_s0] sm:$0xff]  ;;  %v36_v10 = vld [vmem:[%s1540_s1 + $0x38] sm:$0xf]  ;;  %v31_v11 = vld [vmem:[%s1540_s1 + $0x10] sm:$0xff]  ;;  %v1183_v0 = vmov 0   ;;  %v39_v1 = vlaneseq }
   0x4   :  { %v1066_v12 = vpack.c.bf16 %v36_v10, %v32_v9  ;;  %v35_v13 = vld [vmem:[%s1540_s1 + $0x30] sm:$0xf]  ;;  %v1083_v16 = vld [vmem:[%s1542_s3] ss:$12 sps:$4 sm:$0xff]   ;;  %v1084_v17 = vld [vmem:[%s1542_s3 + $0x1c] ss:$12 sps:$4 sm:$0xff]  }
   0x5   :  { %1062 = vmatprep.subr.msk.bf16.mxu1 %vm1230_vm2, %v1060_v4  ;;  %v1069_v14 = vpack.c.bf16 %v35_v13, %v31_v11  ;;  %v1081_v15 = vld [vmem:[%s1542_s3 + $0x4] ss:$12 sps:$4 sm:$0xff]   ;;  %v1087_v19 = vld [vmem:[%s1542_s3 + $0x34] ss:$12 sps:$4 sm:$0xff]   ;;  %v1090_v21 = vld [vmem:[%s1542_s3 + $0x4c] ss:$12 sps:$4 sm:$0xff]  }
   0x6   :  { %1065 = vmatpush1.bf16.msk.msra.mxu1 %vm1230_vm2, %v1063_v7  ;;  %747 = vmatprep.subr.bf16.mxu0 %v1081_v15  ;;  %v1086_v18 = vld [vmem:[%s1542_s3 + $0x18] ss:$12 sps:$4 sm:$0xff]   ;;  %v1089_v20 = vld [vmem:[%s1542_s3 + $0x30] ss:$12 sps:$4 sm:$0xff]   ;;  %v1092_v22 = vld [vmem:[%s1542_s3 + $0x48] ss:$12 sps:$4 sm:$0xff]  }
   0x7   :  { %1068 = vmatprep.subr.msk.bf16.mxu1 %vm1230_vm2, %v1066_v12  ;;  %748 = vmatpush1.bf16.msra.mxu0 %v1083_v16  ;;  %v1107_v23 = vld [vmem:[%s1542_s3 + $0xc8] ss:$12 sps:$4 sm:$0xff]   ;;  %v1093_v24 = vld [vmem:[%s1542_s3 + $0x64] ss:$12 sps:$4 sm:$0xff]   ;;  %v1095_v26 = vld [vmem:[%s1542_s3 + $0x60] ss:$12 sps:$4 sm:$0xff]  }
   0x8   :  { %749 = vmatprep.subr.bf16.mxu0 %v1084_v17  ;;  %v1109_v25 = vld [vmem:[%s1542_s3 + $0x8] ss:$12 sps:$4 sm:$0xff]   ;;  %v1112_v28 = vld [vmem:[%s1542_s3 + $0xe0] ss:$12 sps:$4 sm:$0xff]   ;;  %v1098_v30 = vld [vmem:[%s1542_s3 + $0x78] ss:$12 sps:$4 sm:$0xff]  }
   0x9   :  { %957 = vmatmul.mubr.msk.f32.vlgmr.msra.gmra.mrb[0].mxu1 %vm59_vm3, %v28_v8  ;;  %v1096_v27 = vld [vmem:[%s1542_s3 + $0x7c] ss:$12 sps:$4 sm:$0xff]   ;;  %v1114_v29 = vld [vmem:[%s1542_s3 + $0x20] ss:$12 sps:$4 sm:$0xff]   ;;  %v1117_v31 = vld [vmem:[%s1542_s3 + $0xf8] ss:$12 sps:$4 sm:$0xff]  }
   0xa   :  { %1071 = vmatpush1.bf16.msk.msra.mxu1 %vm1230_vm2, %v1069_v14  ;;  %211 = vmatprep.mubr.f32.mxu1 %v1182_v3  ;;  %v1119_v32 = vld [vmem:[%s1542_s3 + $0x38] ss:$12 sps:$4 sm:$0xff]   ;;  %v1099_v33 = vld [vmem:[%s1542_s3 + $0x94] ss:$12 sps:$4 sm:$0xff]   ;;  %v1122_v34 = vld [vmem:[%s1542_s3 + $0x110] ss:$12 sps:$4 sm:$0xff]  }
   0xb   :  { %750 = vmatpush1.bf16.msra.mxu0 %v1086_v18  ;;  %1038 = vmatprep.subr.bf16.mxu1 %v1107_v23  ;;  %v1101_v35 = vld [vmem:[%s1542_s3 + $0x90] ss:$12 sps:$4 sm:$0xff]   ;;  %v1102_v37 = vld [vmem:[%s1542_s3 + $0xac] ss:$12 sps:$4 sm:$0xff]   ;;  %v1127_v38 = vld [vmem:[%s1542_s3 + $0x128] ss:$12 sps:$4 sm:$0xff]  }
   0xc   :  { %751 = vmatprep.subr.bf16.mxu0 %v1087_v19  ;;  %v1124_v36 = vld [vmem:[%s1542_s3 + $0x50] ss:$12 sps:$4 sm:$0xff]   ;;  %v1104_v39 = vld [vmem:[%s1542_s3 + $0xa8] ss:$12 sps:$4 sm:$0xff]   ;;  %v1132_v42 = vld [vmem:[%s1542_s3 + $0x140] ss:$12 sps:$4 sm:$0xff]  }
   0xd   :  { %960 = vmatmul.mubr.msk.f32.vlgmr.msra.gmra.mrb[2].mxu1 %vm59_vm3, %v28_v8  ;;  %v1129_v40 = vld [vmem:[%s1542_s3 + $0x68] ss:$12 sps:$4 sm:$0xff]   ;;  %v1105_v41 = vld [vmem:[%s1542_s3 + $0xc4] ss:$12 sps:$4 sm:$0xff]   ;;  %v1108_v43 = vld [vmem:[%s1542_s3 + $0xc0] ss:$12 sps:$4 sm:$0xff]  }
   0xe   :  { %1039 = vmatpush3.bf16.msra.mxu1 %v1109_v25  ;;  %v1110_v44 = vld [vmem:[%s1542_s3 + $0xdc] ss:$12 sps:$4 sm:$0xff]   ;;  %v1134_v45 = vld [vmem:[%s1542_s3 + $0x80] ss:$12 sps:$4 sm:$0xff]   ;;  %v1113_v46 = vld [vmem:[%s1542_s3 + $0xd8] ss:$12 sps:$4 sm:$0xff]  }
   0xf   :  { %752 = vmatpush1.bf16.msra.mxu0 %v1089_v20  ;;  %1040 = vmatprep.subr.bf16.mxu1 %v1112_v28  ;;  %v1115_v47 = vld [vmem:[%s1542_s3 + $0xf4] ss:$12 sps:$4 sm:$0xff]   ;;  %v1118_v48 = vld [vmem:[%s1542_s3 + $0xf0] ss:$12 sps:$4 sm:$0xff]   ;;  %v1120_v49 = vld [vmem:[%s1542_s3 + $0x10c] ss:$12 sps:$4 sm:$0xff]  }
  0x10   :  { %753 = vmatprep.subr.bf16.mxu0 %v1090_v21  ;;  %v1123_v50 = vld [vmem:[%s1542_s3 + $0x108] ss:$12 sps:$4 sm:$0xff]   ;;  %v1125_v51 = vld [vmem:[%s1542_s3 + $0x124] ss:$12 sps:$4 sm:$0xff]   ;;  %v1128_v52 = vld [vmem:[%s1542_s3 + $0x120] ss:$12 sps:$4 sm:$0xff]  }
  0x11   :  { %v1130_v53 = vld [vmem:[%s1542_s3 + $0x13c] ss:$12 sps:$4 sm:$0xff]   ;;  %v1133_v54 = vld [vmem:[%s1542_s3 + $0x138] ss:$12 sps:$4 sm:$0xff]   ;;  %v1135_v55 = vld [vmem:[%s1542_s3 + $0x154] ss:$12 sps:$4 sm:$0xff]  }
  0x12   :  { %1041 = vmatpush3.bf16.msra.mxu1 %v1114_v29  ;;  %v1137_v56 = vld [vmem:[%s1542_s3 + $0x158] ss:$12 sps:$4 sm:$0xff]   ;;  %v1138_v57 = vld [vmem:[%s1542_s3 + $0x150] ss:$12 sps:$4 sm:$0xff]   ;;  %v1143_v61 = vld [vmem:[%s1542_s3 + $0x168] ss:$12 sps:$4 sm:$0xff]  }
  0x13   :  { %754 = vmatpush1.bf16.msra.mxu0 %v1092_v22  ;;  %1042 = vmatprep.subr.bf16.mxu1 %v1117_v31  ;;  %v1139_v58 = vld [vmem:[%s1542_s3 + $0x98] ss:$12 sps:$4 sm:$0xff]   ;;  %v1142_v60 = vld [vmem:[%s1542_s3 + $0x170] ss:$12 sps:$4 sm:$0xff]   ;;  %v1412_v2 = vshrl.u32 %v39_v1, 7 }
  0x14   :  { %755 = vmatprep.subr.bf16.mxu0 %v1093_v24  ;;  %v1140_v59 = vld [vmem:[%s1542_s3 + $0x16c] ss:$12 sps:$4 sm:$0xff]   ;;  %v1144_v62 = vld [vmem:[%s1542_s3 + $0xb0] ss:$12 sps:$4 sm:$0xff]   ;;  %v1420_v4 = vld [vmem:[%s1543_s2] sm:$0xf] }
  0x15   :  { %v1147_v63 = vld [vmem:[%s1542_s3 + $0x184] ss:$12 sps:$4 sm:$0xff]   ;;  %v1415_v3 = vsub.s32 0, %v1412_v2  ;;  %v1423_v5 = vsub.s32 1, %v1412_v2  ;;  %v53_v8 = vsub.s32 3, %v1412_v2 }
  0x16   :  { %1043 = vmatpush3.bf16.msra.mxu1 %v1119_v32  ;;  %v1145_v19 = vld [vmem:[%s1542_s3 + $0x180] ss:$12 sps:$4 sm:$0xff]   ;;  %v1148_v20 = vld [vmem:[%s1542_s3 + $0x188] ss:$12 sps:$4 sm:$0xff]   ;;  %v1149_v25 = vld [vmem:[%s1542_s3 + $0x198] ss:$12 sps:$4 sm:$0xff]  }
  0x17   :  { %756 = vmatpush1.bf16.msra.mxu0 %v1095_v26  ;;  %1044 = vmatprep.subr.bf16.mxu1 %v1122_v34  ;;  %v42_v6 = vrot.slane %v1420_v4, %v1415_v3  ;;  %v46_v7 = vrot.slane %v1420_v4, %v1423_v5  ;;  %v54_v13 = vrot.slane %v1420_v4, %v53_v8  ;;  %v1151_v23 = vld [vmem:[%s1542_s3 + $0x19c] ss:$12 sps:$4 sm:$0xff]   ;;  %v1152_v26 = vld [vmem:[%s1542_s3 + $0x1a0] ss:$12 sps:$4 sm:$0xff]   ;;  %v1163_v34 = vld [vmem:[%s1542_s3 + $0x1e4] ss:$12 sps:$4 sm:$0xff]  }
  0x18   :  { %757 = vmatprep.subr.bf16.mxu0 %v1096_v27  ;;  %v1155_v28 = vld [vmem:[%s1542_s3 + $0x1b4] ss:$12 sps:$4 sm:$0xff]   ;;  %v1153_v29 = vld [vmem:[%s1542_s3 + $0x1b0] ss:$12 sps:$4 sm:$0xff]   ;;  %v1159_v31 = vld [vmem:[%s1542_s3 + $0x1cc] ss:$12 sps:$4 sm:$0xff]  }
  0x19   :  { %v1157_v32 = vld [vmem:[%s1542_s3 + $0x1c8] ss:$12 sps:$4 sm:$0xff]  }
  0x1a   :  { %1045 = vmatpush3.bf16.msra.mxu1 %v1124_v36  ;;  %v1164_v36 = vld [vmem:[%s1542_s3 + $0x1e8] ss:$12 sps:$4 sm:$0xff]  }
  0x1b   :  { %758 = vmatpush1.bf16.msra.mxu0 %v1098_v30  ;;  %1046 = vmatprep.subr.bf16.mxu1 %v1127_v38  ;;  %v1156_v30 = vld [vmem:[%s1542_s3 + $0x1b8] ss:$12 sps:$4 sm:$0xff]  }
  0x1c   :  { %759 = vmatprep.subr.bf16.mxu0 %v1099_v33  ;;  %v1160_v33 = vld [vmem:[%s1542_s3 + $0x1d0] ss:$12 sps:$4 sm:$0xff]   ;;  %v1165_v38 = vld [vmem:[%s1542_s3 + $0x1f8] ss:$12 sps:$4 sm:$0xff]  }
  0x1e   :  { %1047 = vmatpush3.bf16.msra.mxu1 %v1129_v40  ;;  %v1171_v40 = vld [vmem:[%s1542_s3 + $0x214] ss:$12 sps:$4 sm:$0xff]  }
  0x1f   :  { %760 = vmatpush1.bf16.msra.mxu0 %v1101_v35  ;;  %1048 = vmatprep.subr.bf16.mxu1 %v1132_v42  ;;  %v1161_v35 = vld [vmem:[%s1542_s3 + $0x1e0] ss:$12 sps:$4 sm:$0xff]   ;;  %v1169_v42 = vld [vmem:[%s1542_s3 + $0x210] ss:$12 sps:$4 sm:$0xff]  }
  0x20   :  { %761 = vmatprep.subr.bf16.mxu0 %v1102_v37  ;;  %v1167_v37 = vld [vmem:[%s1542_s3 + $0x1fc] ss:$12 sps:$4 sm:$0xff]  }
  0x22   :  { %1049 = vmatpush3.bf16.msra.mxu1 %v1134_v45  ;;  %v1175_v45 = vld [vmem:[%s1542_s3 + $0x22c] ss:$12 sps:$4 sm:$0xff]  }
  0x23   :  { %762 = vmatpush1.bf16.msra.mxu0 %v1104_v39  ;;  %1050 = vmatprep.subr.bf16.mxu1 %v1137_v56  ;;  %v1168_v39 = vld [vmem:[%s1542_s3 + $0x200] ss:$12 sps:$4 sm:$0xff]  }
  0x24   :  { %763 = vmatprep.subr.bf16.mxu0 %v1105_v41  ;;  %v49_v41 = vsub.s32 2, %v1412_v2 }
  0x26   :  { %1051 = vmatpush3.bf16.msra.mxu1 %v1139_v58 }
  0x27   :  { %764 = vmatpush1.bf16.msra.mxu0 %v1108_v43  ;;  %1052 = vmatprep.subr.bf16.mxu1 %v1142_v60  ;;  %v1172_v43 = vld [vmem:[%s1542_s3 + $0x218] ss:$12 sps:$4 sm:$0xff]  }
  0x28   :  { %765 = vmatprep.subr.bf16.mxu0 %v1110_v44  ;;  %v50_v44 = vrot.slane %v1420_v4, %v49_v41 }
  0x2a   :  { %1053 = vmatpush3.bf16.msra.mxu1 %v1144_v62  ;;  %v912_v62 = vld [vmem:[%s1545_s5] sm:$0x7] }
  0x2b   :  { %766 = vmatpush1.bf16.msra.mxu0 %v1113_v46  ;;  %869 = vmatprep.subr.bf16.mxu1 %v1183_v0  ;;  %v1173_v46 = vld [vmem:[%s1542_s3 + $0x228] ss:$12 sps:$4 sm:$0xff]   ;;  %v917_v8 = vrot.slane %v912_v62, %v1415_v3 }
  0x2c   :  { %767 = vmatprep.subr.bf16.mxu0 %v1115_v47  ;;  %v1176_v47 = vld [vmem:[%s1542_s3 + $0x230] ss:$12 sps:$4 sm:$0xff]  }
  0x2f   :  { %768 = vmatpush1.bf16.msra.mxu0 %v1118_v48 }
  0x30   :  { %769 = vmatprep.subr.bf16.mxu0 %v1120_v49  ;;  %v1179_v49 = vld [vmem:[%s1542_s3 + $0x244] ss:$12 sps:$4 sm:$0xff]  }
  0x33   :  { %770 = vmatpush1.bf16.msra.mxu0 %v1123_v50  ;;  %v1177_v50 = vld [vmem:[%s1542_s3 + $0x240] ss:$12 sps:$4 sm:$0xff]  }
  0x34   :  { %771 = vmatprep.subr.bf16.mxu0 %v1125_v51  ;;  %v1180_v51 = vld [vmem:[%s1542_s3 + $0x248] ss:$12 sps:$4 sm:$0xff]  }
  0x37   :  { %772 = vmatpush1.bf16.msra.mxu0 %v1128_v52 }
  0x38   :  { %773 = vmatprep.subr.bf16.mxu0 %v1130_v53 }
  0x3b   :  { %774 = vmatpush1.bf16.msra.mxu0 %v1133_v54 }
  0x3c   :  { %775 = vmatprep.subr.bf16.mxu0 %v1135_v55 }
  0x3f   :  { %776 = vmatpush1.bf16.msra.mxu0 %v1138_v57 }
  0x40   :  { %777 = vmatprep.subr.bf16.mxu0 %v1140_v59  ;;  %v326_v59 = vld [vmem:[%s1544_s4] sm:$0x7] }
  0x41   :  { %v339_v60 = vrot.slane %v326_v59, %v49_v41 }
  0x43   :  { %778 = vmatpush1.bf16.msra.mxu0 %v1143_v61  ;;  %v331_v61 = vrot.slane %v326_v59, %v1415_v3 }
  0x44   :  { %788 = vmatprep.subr.bf16.mxu0 %v1147_v63  ;;  %v335_v63 = vrot.slane %v326_v59, %v1423_v5 }
  0xdc   :  { %v142_v9 = vpop.f32.mrb[0].mxu1 }
  0xdd   :  { %v143_v10 = vadd.f32 %v142_v9, %v42_v6  ;;  %v144_v11 = vpop.f32.mrb[1].mxu1 }
  0xde   :  { %v145_v12 = vadd.f32 %v144_v11, %v46_v7 }
  0xdf   :  { %v218_v14 = vmax.f32 %v143_v10, 0.0 }
  0xe0   :  { %v219_v15 = vmax.f32 %v145_v12, 0.0  ;;  %v1431_v16 = vpop.f32.mrb[2].mxu1  ;;  %v925_v12 = vrot.slane %v912_v62, %v49_v41 }
  0xe1   :  { %v215_v17 = vpop.f32.mrb[3].mxu1  ;;  %v222_v22 = vpack.c.bf16 %v218_v14, %v218_v14  ;;  %v214_v48 = vadd.f32 %v1431_v16, %v50_v44  ;;  %v921_v14 = vrot.slane %v912_v62, %v1423_v5  ;;  %v939_v5 = vstv %s1546_s6 }
  0xe2   :  { %v223_v18 = vpack.c.bf16 %v219_v15, %v219_v15  ;;  %v216_v21 = vadd.f32 %v215_v17, %v54_v13 }
  0xe3   :  { %v220_v52 = vmax.f32 %v214_v48, 0.0 }
  0xe4   :  { %779 = vmatprep.mubr.bf16.mxu0 %v223_v18  ;;  %861 = vmatprep.mubr.bf16.mxu1 %v223_v18  ;;  %v221_v24 = vmax.f32 %v216_v21, 0.0 }
  0xe5   :  { %780 = vmatmul.mubr.bf16.vlgmr.msra.gmra.mrb[0].mxu0 %v222_v22  ;;  %862 = vmatmul.mubr.bf16.vlgmr.msra.gmra.mrb[4].mxu1 %v222_v22  ;;  %v224_v53 = vpack.c.bf16 %v220_v52, %v220_v52 }
  0xe6   :  { %789 = vmatpush1.bf16.msra.mxu0 %v1145_v19  ;;  %870 = vmatpush1.bf16.msra.mxu1 %v1148_v20  ;;  %v225_v27 = vpack.c.bf16 %v221_v24, %v221_v24 }
  0xe7   :  { %790 = vmatprep.subr.bf16.mxu0 %v1151_v23  ;;  %871 = vmatprep.subr.bf16.mxu1 %v1183_v0 }
  0xe8   :  { %1036 = vmatprep.mubr.msk.bf16.mxu0 %vm743_vm4, %v225_v27  ;;  %1037 = vmatprep.mubr.msk.bf16.mxu1 %vm743_vm4, %v225_v27  ;;  %v943_v27 = vand.u32 127, %v39_v1 }
  0xea   :  { %791 = vmatpush1.bf16.msra.mxu0 %v1149_v25  ;;  %872 = vmatpush1.bf16.msra.mxu1 %v1152_v26 }
  0xeb   :  { %792 = vmatprep.subr.bf16.mxu0 %v1155_v28  ;;  %873 = vmatprep.subr.bf16.mxu1 %v1183_v0  ;;  %v946_v28 = vsub.s32 %v943_v27, %v1412_v2 }
  0xee   :  { %793 = vmatpush1.bf16.msra.mxu0 %v1153_v29  ;;  %874 = vmatpush1.bf16.msra.mxu1 %v1156_v30 }
  0xef   :  { %794 = vmatprep.subr.bf16.mxu0 %v1159_v31  ;;  %875 = vmatprep.subr.bf16.mxu1 %v1183_v0 }
  0xf2   :  { %795 = vmatpush1.bf16.msra.mxu0 %v1157_v32  ;;  %876 = vmatpush1.bf16.msra.mxu1 %v1160_v33 }
  0xf3   :  { %796 = vmatprep.subr.bf16.mxu0 %v1163_v34  ;;  %877 = vmatprep.subr.bf16.mxu1 %v1183_v0 }
  0xf6   :  { %797 = vmatpush1.bf16.msra.mxu0 %v1161_v35  ;;  %878 = vmatpush1.bf16.msra.mxu1 %v1164_v36 }
  0xf7   :  { %798 = vmatprep.subr.bf16.mxu0 %v1167_v37  ;;  %879 = vmatprep.subr.bf16.mxu1 %v1183_v0 }
  0xfa   :  { %799 = vmatpush1.bf16.msra.mxu0 %v1165_v38  ;;  %880 = vmatpush1.bf16.msra.mxu1 %v1168_v39 }
  0xfb   :  { %800 = vmatprep.subr.bf16.mxu0 %v1171_v40  ;;  %881 = vmatprep.subr.bf16.mxu1 %v1183_v0 }
  0xfe   :  { %801 = vmatpush1.bf16.msra.mxu0 %v1169_v42  ;;  %882 = vmatpush1.bf16.msra.mxu1 %v1172_v43 }
  0xff   :  { %802 = vmatprep.subr.bf16.mxu0 %v1175_v45  ;;  %883 = vmatprep.subr.bf16.mxu1 %v1183_v0 }
 0x102   :  { %803 = vmatpush1.bf16.msra.mxu0 %v1173_v46  ;;  %884 = vmatpush1.bf16.msra.mxu1 %v1176_v47 }
 0x103   :  { %804 = vmatprep.subr.bf16.mxu0 %v1179_v49  ;;  %885 = vmatprep.subr.bf16.mxu1 %v1183_v0 }
 0x106   :  { %805 = vmatpush1.bf16.msra.mxu0 %v1177_v50  ;;  %886 = vmatpush1.bf16.msra.mxu1 %v1180_v51 }
 0x109   :  { %821 = vmatmul.mubr.bf16.vlgmr.msra.gmra.mrb[0].mxu0 %v224_v53  ;;  %902 = vmatmul.mubr.bf16.vlgmr.msra.gmra.mrb[8].mxu1 %v224_v53 }
 0x1b8   :  { %v1054_v54 = vpop.f32.mrb[4].mxu1 }
 0x1b9   :  { %v1055_v55 = vpop.f32.mrb[5].mxu1 }
 0x1ba   :  { %v1056_v56 = vadd.f32 %v1055_v55, %v1054_v54  ;;  %v1057_v57 = vpop.f32.mrb[6].mxu1 }
 0x1bb   :  { %v1058_v58 = vpop.f32.mrb[7].mxu1 }
 0x1bc   :  { %v864_v0 = vadd.f32 %v1056_v56, %v339_v60 }
 0x1dc   :  { %v822_v4 = vpop.f32.mrb[0].mxu0  ;;  %v903_v6 = vpop.f32.mrb[8].mxu1 }
 0x1dd   :  { %v1072_v7 = vadd.f32 %v822_v4, %v331_v61  ;;  %v904_v9 = vadd.f32 %v903_v6, %v864_v0  ;;  %v824_v10 = vpop.f32.mrb[1].mxu0  ;;  %v905_v11 = vpop.f32.mrb[9].mxu1 }
 0x1de   :  { %v1073_v13 = vadd.f32 %v824_v10, %v335_v63  ;;  %v826_v15 = vpop.f32.mrb[2].mxu0  ;;  %v906_v16 = vpop.f32.mrb[10].mxu1 }
 0x1df   :  { %v909_v17 = vmax.f32 %v1072_v7, 0.0  ;;  %v911_v18 = vmax.f32 %v904_v9, 0.0  ;;  %v827_v19 = vpop.f32.mrb[3].mxu0  ;;  %v907_v20 = vpop.f32.mrb[11].mxu1 }
 0x1e0   :  { %v910_v21 = vmax.f32 %v1073_v13, 0.0 }
 0x1e1   :  { %v929_v22 = vmul.f32 %v917_v8, %v909_v17  ;;  %v931_v23 = vmul.f32 %v925_v12, %v911_v18 }
 0x1e2   :  { %v930_v24 = vmul.f32 %v921_v14, %v910_v21 }
 0x1e3   :  { %v934_v3 = vsel %vm933_vm5, %v931_v23, 0.0 }
 0x1e4   :  { %v932_v25 = vadd.f32 %v930_v24, %v929_v22 }
 0x1e6   :  { %v935_v26 = vadd.f32 %v934_v3, %v932_v25 }
 0x1e8   :  { %936 = vadd.xlane.f32.xlu0 %v935_v26 }
 0x275   :  { %v937_v29 = vpop.xlane.xlu0 %936 }
 0x276   :  { %v940_v30 = vadd.f32 %v939_v5, %v937_v29 }
 0x278   :  { %v947_v31 = vrot.slane %v940_v30, %v946_v28 }
 0x27a   :  { %950 = vst.msk [vmem:[%s1547_s7] sm:$0x1] %vm949_vm6, %v947_v31 }

</bundles_post_ra>
